<compile_context>
chip_gen: v5e
topology: v5e:2x2
jax: 0.10.0
libtpu: 0.0.40
codegen_flags: <defaults>
</compile_context>

<pallas_src>
import functools

import jax
import jax.numpy as jnp
from jax.experimental import pallas as pl
from jax.experimental.pallas import tpu as pltpu


# -----------------------------------------------------------------------------
# Kernels
# -----------------------------------------------------------------------------
def _bn1d_fused_kernel(x_ref, gamma_ref, beta_ref, y_ref, mean_ref, var_ref, *,
                       eps, inv_count):
    """Single-pass BatchNorm1d: stats + normalize + affine, whole x resident."""
    x = x_ref[...].astype(jnp.float32)                    # (N, C, T)
    # Reduce batch first (cheap VPU adds), then one cross-lane (XLU) reduce.
    s_ct = jnp.sum(x, axis=0)                             # (C, T)
    q_ct = jnp.sum(x * x, axis=0)                         # (C, T)
    s = jnp.sum(s_ct, axis=-1, keepdims=True)[None]       # (1, C, 1)
    q = jnp.sum(q_ct, axis=-1, keepdims=True)[None]       # (1, C, 1)
    mean = s * inv_count
    # NOTE: E[x^2]-E[x]^2 (clamped >= 0); f32 accumulation keeps this close to
    # the PyTorch two-pass reference for typical data.
    var = jnp.maximum(q * inv_count - mean * mean, 0.0)
    inv_std = jax.lax.rsqrt(var + eps)
    scale = gamma_ref[...] * inv_std                      # (1, C, 1)
    shift = beta_ref[...] - mean * scale                  # (1, C, 1)
    y_ref[...] = (x * scale + shift).astype(y_ref.dtype)
    mean_ref[...] = mean
    var_ref[...] = var


def _bn1d_stats_kernel(x_ref, sum_ref, sq_ref, *, tile_t, total_t, tiles_per_core):
    """Accumulate per-channel sum / sum-of-squares over T tiles.

    Grid: (split, tiles_per_core).  The leading "parallel" axis shards the
    reduction across TensorCores (v7x megacore); each split owns its own
    (1, C, 1) partial accumulators (combined later in JAX glue).
    """
    c = pl.program_id(0)          # "parallel" split index
    t = pl.program_id(1)          # "arbitrary" tile index within this split

    @pl.when(t == 0)
    def _init():
        sum_ref[...] = jnp.zeros_like(sum_ref)
        sq_ref[...] = jnp.zeros_like(sq_ref)

    # Mask lanes outside [0, T): covers both the ragged last tile and grid
    # slots whose (clamped) tile index duplicates an already-counted tile.
    global_tile = c * tiles_per_core + t
    lane = jax.lax.broadcasted_iota(jnp.int32, (1, 1, tile_t), 2)
    valid = (global_tile * tile_t + lane) < total_t        # (1, 1, tile_t)

    x = jnp.where(valid, x_ref[...].astype(jnp.float32), 0.0)   # (N, C, tile_t)

    s_ct = jnp.sum(x, axis=0)                               # (C, tile_t) VPU
    q_ct = jnp.sum(x * x, axis=0)                           # (C, tile_t) VPU
    sum_ref[...] += jnp.sum(s_ct, axis=-1, keepdims=True)[None]   # single XLU reduce
    sq_ref[...] += jnp.sum(q_ct, axis=-1, keepdims=True)[None]


def _bn1d_apply_kernel(x_ref, scale_ref, shift_ref, y_ref):
    """y = x * scale + shift on one T tile (affine already folded in)."""
    x = x_ref[...].astype(jnp.float32)                      # (N, C, tile_t)
    y_ref[...] = (x * scale_ref[...] + shift_ref[...]).astype(y_ref.dtype)


# -----------------------------------------------------------------------------
# Sizing helpers
# -----------------------------------------------------------------------------
def _vmem_capacity_bytes():
    try:
        return int(pltpu.get_tpu_info().vmem_capacity_bytes)
    except Exception:
        return 64 << 20          # conservative fallback (v7x physical VMEM)


def _pick_tile_t(T, N, C, itemsize, vmem_cap):
    """Largest lane-dense (multiple-of-128) tile targeting ~vmem_cap/16 bytes."""
    if T < 128:
        return T                                   # full extent is the only legal block
    per_step = max(1, N * C * itemsize)            # bytes per time index of a block
    target = max(128 * per_step, vmem_cap // 16)   # ~4 MiB on v7x, ~8 MiB on v5e/v6e
    tile = (target // per_step) // 128 * 128
    tile = max(128, tile)
    tile = min(tile, (T // 128) * 128)             # never exceed the array extent
    return int(tile)


def _vmem_limit(need, vmem_cap):
    """Per-pass scoped-VMEM budget: sized from need (+50% safety), with headroom
    left under the physical capacity for Mosaic internal scratch/semaphores."""
    return int(max(16 << 20, min(int(need * 1.5) + (4 << 20), vmem_cap - (12 << 20))))


# -----------------------------------------------------------------------------
# Forward wrapper
# -----------------------------------------------------------------------------
def batchnorm1d_forward(x, gamma, beta, *, eps=1e-6, force_tiled=False,
                        tile_t_override=None):
    """Training-mode BatchNorm1d forward.

    Returns:
      y:    (N, C, T) normalized output (x.dtype)
      mean: (1, C, 1) f32 batch mean
      var:  (1, C, 1) f32 batch (biased) variance
    """
    N, C, T = x.shape
    itemsize = jnp.dtype(x.dtype).itemsize
    vmem_cap = _vmem_capacity_bytes()
    count = float(N * T)

    gamma3 = gamma.reshape(1, C, 1).astype(jnp.float32)
    beta3 = beta.reshape(1, C, 1).astype(jnp.float32)

    # --- Fused single-pass fast path (x fits comfortably in VMEM) ------------
    bytes_x = N * C * T * itemsize
    bytes_x_f32 = N * C * T * 4
    fused_need = 2 * bytes_x + 4 * bytes_x_f32 + (4 << 20)
    if (not force_tiled) and (fused_need <= vmem_cap // 2):
        y, mean, var = pl.pallas_call(
            functools.partial(_bn1d_fused_kernel, eps=eps, inv_count=1.0 / count),
            out_shape=(
                jax.ShapeDtypeStruct((N, C, T), x.dtype),
                jax.ShapeDtypeStruct((1, C, 1), jnp.float32),
                jax.ShapeDtypeStruct((1, C, 1), jnp.float32),
            ),
            compiler_params=pltpu.CompilerParams(
                vmem_limit_bytes=_vmem_limit(fused_need, vmem_cap)),
        )(x, gamma3, beta3)
        return y, mean, var

    # --- Tiled two-pass path --------------------------------------------------
    tile_t = tile_t_override if tile_t_override is not None else _pick_tile_t(
        T, N, C, itemsize, vmem_cap)
    n_tiles = (T + tile_t - 1) // tile_t
    n_split = 2                                   # megacore split; harmless on 1-TC chips
    tiles_per_core = (n_tiles + n_split - 1) // n_split

    blk_in = N * C * tile_t * itemsize
    blk_f32 = N * C * tile_t * 4

    def x_stats_index(c, t):
        # Clamp duplicated trailing grid slots; their contribution is masked to
        # zero inside the kernel, so only the DMA address needs to stay legal.
        return (0, 0, jnp.minimum(c * tiles_per_core + t, n_tiles - 1))

    part_spec = pl.BlockSpec((1, C, 1), lambda c, t: (c, 0, 0))

    # Pass 1: per-core-slice partial sums / sums-of-squares.
    part_sum, part_sq = pl.pallas_call(
        functools.partial(_bn1d_stats_kernel, tile_t=tile_t, total_t=T,
                          tiles_per_core=tiles_per_core),
        grid=(n_split, tiles_per_core),
        in_specs=[pl.BlockSpec((N, C, tile_t), x_stats_index)],
        out_specs=(part_spec, part_spec),
        out_shape=(
            jax.ShapeDtypeStruct((n_split, C, 1), jnp.float32),
            jax.ShapeDtypeStruct((n_split, C, 1), jnp.float32),
        ),
        compiler_params=pltpu.CompilerParams(
            dimension_semantics=("parallel", "arbitrary"),
            vmem_limit_bytes=_vmem_limit(2 * blk_in + 4 * blk_f32, vmem_cap),
        ),
    )(x)

    # Tiny per-channel glue: combine partials, fold affine into scale/shift.
    s = jnp.sum(part_sum, axis=0, keepdims=True)            # (1, C, 1)
    q = jnp.sum(part_sq, axis=0, keepdims=True)              # (1, C, 1)
    mean = s / count
    var = jnp.maximum(q / count - mean * mean, 0.0)
    inv_std = jax.lax.rsqrt(var + eps)
    scale = gamma3 * inv_std
    shift = beta3 - mean * scale

    x_spec = pl.BlockSpec((N, C, tile_t), lambda t: (0, 0, t))
    const_spec = pl.BlockSpec((1, C, 1), lambda t: (0, 0, 0))

    # Pass 2: y = x * scale + shift (ragged tail needs no mask: OOB stores drop).
    y = pl.pallas_call(
        _bn1d_apply_kernel,
        grid=(n_tiles,),
        in_specs=[x_spec, const_spec, const_spec],
        out_specs=x_spec,
        out_shape=jax.ShapeDtypeStruct((N, C, T), x.dtype),
        compiler_params=pltpu.CompilerParams(
            dimension_semantics=("parallel",),
            vmem_limit_bytes=_vmem_limit(4 * blk_in + 3 * blk_f32, vmem_cap),
        ),
    )(x, scale, shift)

    return y, mean, var


def update_running_stats(mean, var, running_mean, running_var, n, momentum=0.1,
                         num_batches_tracked=1):
    """Plain-JAX glue mirroring BatchNorm1d's running-stat buffer update.

    `num_batches_tracked` must already include the current batch (PyTorch
    increments the counter before computing the factor).
    """
    # TODO(synk): num_batches_tracked itself is host-side module state; only the
    # buffer arithmetic is reproduced here.
    if momentum is None:
        factor = 1.0 / float(num_batches_tracked)
    else:
        factor = momentum
    bessel = n / (n - 1.0) if n > 1.0 else 1.0       # guard n == 1
    new_mean = factor * mean + (1.0 - factor) * running_mean
    new_var = factor * var * bessel + (1.0 - factor) * running_var
    return new_mean, new_var


if __name__ == "__main__":
    key = jax.random.PRNGKey(0)
    k1, k2 = jax.random.split(key)

    # ---------------- Test 1: small shape -> fused single-pass path ----------
    N, C, T = 2, 4, 16
    x = jax.random.normal(k1, (N, C, T), dtype=jnp.float32) * 2.0 + 0.5
    gamma = jnp.ones((C,), dtype=jnp.float32)       # nn.Parameter(torch.ones(C))
    beta = jnp.zeros((C,), dtype=jnp.float32)       # nn.Parameter(torch.zeros(C))

    y, mean, var = batchnorm1d_forward(x, gamma, beta, eps=1e-6)
    jax.block_until_ready(y)

    ref_mean = jnp.mean(x, axis=(0, 2), keepdims=True)
    ref_var = jnp.mean((x - ref_mean) ** 2, axis=(0, 2), keepdims=True)
    ref_y = gamma.reshape(1, C, 1) * (x - ref_mean) / jnp.sqrt(ref_var + 1e-6) \
        + beta.reshape(1, C, 1)
    assert jnp.allclose(mean, ref_mean, atol=1e-5, rtol=1e-5)
    assert jnp.allclose(var, ref_var, atol=1e-5, rtol=1e-5)
    assert jnp.allclose(y, ref_y, atol=1e-4, rtol=1e-4)

    # Running-stat buffer update (side-effect glue, not the hot path).
    running_mean = jnp.zeros((1, C, 1), jnp.float32)
    running_var = jnp.ones((1, C, 1), jnp.float32)
    rm, rv = update_running_stats(mean, var, running_mean, running_var,
                                  n=float(N * T), momentum=0.1,
                                  num_batches_tracked=1)
    jax.block_until_ready((rm, rv))

    # ------- Test 2: ragged T, forced tiled two-pass path ---------------------
    # (odd tile count exercises the parallel split, index clamp and lane mask)
    N2, C2, T2 = 2, 4, 1000
    x2 = jax.random.normal(k2, (N2, C2, T2), dtype=jnp.float32) * 1.5 - 0.25
    g2 = jnp.linspace(0.5, 1.5, C2, dtype=jnp.float32)
    b2 = jnp.linspace(-0.2, 0.3, C2, dtype=jnp.float32)

    y2, mean2, var2 = batchnorm1d_forward(x2, g2, b2, eps=1e-6,
                                          force_tiled=True, tile_t_override=384)
    jax.block_until_ready(y2)

    ref_mean2 = jnp.mean(x2, axis=(0, 2), keepdims=True)
    ref_var2 = jnp.mean((x2 - ref_mean2) ** 2, axis=(0, 2), keepdims=True)
    ref_y2 = g2.reshape(1, C2, 1) * (x2 - ref_mean2) / jnp.sqrt(ref_var2 + 1e-6) \
        + b2.reshape(1, C2, 1)
    assert jnp.allclose(mean2, ref_mean2, atol=1e-5, rtol=1e-5)
    assert jnp.allclose(var2, ref_var2, atol=1e-5, rtol=1e-5)
    assert jnp.allclose(y2, ref_y2, atol=1e-4, rtol=1e-4)

    print("KERNEL_OK")
</pallas_src>

<mosaic_0001>
module attributes {stable_mosaic.version = 11 : i64} {
  func.func @_bn1d_fused_kernel(%arg0: memref<2x4x16xf32, #tpu.memory_space<vmem>>, %arg1: memref<1x4x1xf32, #tpu.memory_space<vmem>>, %arg2: memref<1x4x1xf32, #tpu.memory_space<vmem>>, %arg3: memref<2x4x16xf32, #tpu.memory_space<vmem>>, %arg4: memref<1x4x1xf32, #tpu.memory_space<vmem>>, %arg5: memref<1x4x1xf32, #tpu.memory_space<vmem>>) attributes {dimension_semantics = [], scalar_prefetch = 0 : i64, scratch_operands = 0 : i64, tpu.core_type = #tpu.core_type<tc>} {
    %c0 = arith.constant 0 : index
    %c0_0 = arith.constant 0 : index
    %c0_1 = arith.constant 0 : index
    %0 = vector.load %arg0[%c0, %c0_0, %c0_1] : memref<2x4x16xf32, #tpu.memory_space<vmem>>, vector<2x4x16xf32>
    %cst = arith.constant dense<0.000000e+00> : vector<4x16xf32>
    %1 = vector.multi_reduction <add>, %0, %cst [0] : vector<2x4x16xf32> to vector<4x16xf32>
    %2 = arith.mulf %0, %0 : vector<2x4x16xf32>
    %cst_2 = arith.constant dense<0.000000e+00> : vector<4x16xf32>
    %3 = vector.multi_reduction <add>, %2, %cst_2 [0] : vector<2x4x16xf32> to vector<4x16xf32>
    %cst_3 = arith.constant dense<0.000000e+00> : vector<4xf32>
    %4 = vector.multi_reduction <add>, %1, %cst_3 [1] : vector<4x16xf32> to vector<4xf32>
    %5 = vector.shape_cast %4 : vector<4xf32> to vector<4x1xf32>
    %6 = vector.shape_cast %5 : vector<4x1xf32> to vector<1x4x1xf32>
    %cst_4 = arith.constant dense<0.000000e+00> : vector<4xf32>
    %7 = vector.multi_reduction <add>, %3, %cst_4 [1] : vector<4x16xf32> to vector<4xf32>
    %8 = vector.shape_cast %7 : vector<4xf32> to vector<4x1xf32>
    %9 = vector.shape_cast %8 : vector<4x1xf32> to vector<1x4x1xf32>
    %cst_5 = arith.constant 3.125000e-02 : f32
    %10 = vector.broadcast %cst_5 : f32 to vector<1x4x1xf32>
    %11 = arith.mulf %6, %10 : vector<1x4x1xf32>
    %cst_6 = arith.constant 3.125000e-02 : f32
    %12 = vector.broadcast %cst_6 : f32 to vector<1x4x1xf32>
    %13 = arith.mulf %9, %12 : vector<1x4x1xf32>
    %14 = arith.mulf %11, %11 : vector<1x4x1xf32>
    %15 = arith.subf %13, %14 : vector<1x4x1xf32>
    %cst_7 = arith.constant 0.000000e+00 : f32
    %16 = vector.broadcast %cst_7 : f32 to vector<1x4x1xf32>
    %17 = arith.maximumf %15, %16 : vector<1x4x1xf32>
    %cst_8 = arith.constant 9.99999997E-7 : f32
    %18 = vector.broadcast %cst_8 : f32 to vector<1x4x1xf32>
    %19 = arith.addf %17, %18 : vector<1x4x1xf32>
    %20 = math.rsqrt %19 : vector<1x4x1xf32>
    %c0_9 = arith.constant 0 : index
    %c0_10 = arith.constant 0 : index
    %c0_11 = arith.constant 0 : index
    %21 = vector.load %arg1[%c0_9, %c0_10, %c0_11] : memref<1x4x1xf32, #tpu.memory_space<vmem>>, vector<1x4x1xf32>
    %22 = arith.mulf %21, %20 : vector<1x4x1xf32>
    %c0_12 = arith.constant 0 : index
    %c0_13 = arith.constant 0 : index
    %c0_14 = arith.constant 0 : index
    %23 = vector.load %arg2[%c0_12, %c0_13, %c0_14] : memref<1x4x1xf32, #tpu.memory_space<vmem>>, vector<1x4x1xf32>
    %24 = arith.mulf %11, %22 : vector<1x4x1xf32>
    %25 = arith.subf %23, %24 : vector<1x4x1xf32>
    %26 = vector.broadcast %22 : vector<1x4x1xf32> to vector<2x4x16xf32>
    %27 = arith.mulf %0, %26 : vector<2x4x16xf32>
    %28 = vector.broadcast %25 : vector<1x4x1xf32> to vector<2x4x16xf32>
    %29 = arith.addf %27, %28 : vector<2x4x16xf32>
    %c0_15 = arith.constant 0 : index
    %c0_16 = arith.constant 0 : index
    %c0_17 = arith.constant 0 : index
    %30 = vector.load %arg3[%c0_15, %c0_16, %c0_17] : memref<2x4x16xf32, #tpu.memory_space<vmem>>, vector<2x4x16xf32>
    tpu.vector_store %arg3[%c0_15, %c0_16, %c0_17], %29 {strides = array<i32>} : memref<2x4x16xf32, #tpu.memory_space<vmem>>, vector<2x4x16xf32>,
    %c0_18 = arith.constant 0 : index
    %c0_19 = arith.constant 0 : index
    %c0_20 = arith.constant 0 : index
    %31 = vector.load %arg4[%c0_18, %c0_19, %c0_20] : memref<1x4x1xf32, #tpu.memory_space<vmem>>, vector<1x4x1xf32>
    tpu.vector_store %arg4[%c0_18, %c0_19, %c0_20], %11 {strides = array<i32>} : memref<1x4x1xf32, #tpu.memory_space<vmem>>, vector<1x4x1xf32>,
    %c0_21 = arith.constant 0 : index
    %c0_22 = arith.constant 0 : index
    %c0_23 = arith.constant 0 : index
    %32 = vector.load %arg5[%c0_21, %c0_22, %c0_23] : memref<1x4x1xf32, #tpu.memory_space<vmem>>, vector<1x4x1xf32>
    tpu.vector_store %arg5[%c0_21, %c0_22, %c0_23], %17 {strides = array<i32>} : memref<1x4x1xf32, #tpu.memory_space<vmem>>, vector<1x4x1xf32>,
    return
  }
}

</mosaic_0001>

<bundles_post_ra>
// kernel: tpu_custom_call.1
= control target key start
LH: loop header
LB: loop body
LE: loop exit
PB: predicated region body
PF: predicated region fallthrough
CT: control target
= control target key end

     0   :  { %vm20_vm0 = vcmask 125952   ;;  %s198_s0 = inlined_call_operand.vmem [shape: f32[2,4,16], index: 0, kind: input, shape index: {}]   ;;  %s199_s1 = inlined_call_operand.vmem [shape: f32[1,4,1], index: 1, kind: input, shape index: {}]   ;;  %s200_s2 = inlined_call_operand.vmem [shape: f32[1,4,1], index: 2, kind: input, shape index: {}]   ;;  %s201_s3 = inlined_call_operand.hbm [shape: f32[2,4,16], index: 3, kind: output, shape index: {0}]   ;;  %s202_s4 = inlined_call_operand.vmem [shape: f32[1,4,1], index: 4, kind: output, shape index: {1}]   ;;  %s203_s5 = inlined_call_operand.vmem [shape: f32[1,4,1], index: 5, kind: output, shape index: {2}]  }
   0x1   :  { %v18_v0 = vld [vmem:[%s198_s0] sm:$0xf]  ;;  %v19_v1 = vld [vmem:[%s198_s0 + $0x4] sm:$0xf] }
   0x2   :  { %v21_v2 = vsel %vm20_vm0, %v18_v0, 0.0  ;;  %v22_v3 = vsel %vm20_vm0, %v19_v1, 0.0  ;;  %v24_v4 = vmul.f32 %v18_v0, %v18_v0  ;;  %v25_v5 = vmul.f32 %v19_v1, %v19_v1 }
   0x3   :  { %11 = vsyncpa [#allocation3], 0  ;;  %v23_v6 = vadd.f32 %v22_v3, %v21_v2  ;;  %v135_v12 = vmov 0   ;;  %vm72_vm1 = vcmask 3072   ;;  %v51_v27 = vld [vmem:[%s199_s1] sm:$0xf] }
   0x4   :  { %v26_v7 = vsel %vm20_vm0, %v24_v4, 0.0  ;;  %v27_v8 = vsel %vm20_vm0, %v25_v5, 0.0  ;;  %105 = vset.pattern.permute.xlu1 %v135_v12  ;;  %106 = vset.pattern.permute.xlu0 %v135_v12  ;;  %v53_v31 = vld [vmem:[%s200_s2] sm:$0xf]  ;;  %s136_s27 = smov [#allocation2]   ;;  %s81_s6 = sshll.u32 %s201_s3, 4  ;;  %s82_s6 = int_to_ptr.hbm [resolvable:$true] %s81_s6 }
   0x5   :  { %v29_v9 = vsel %vm20_vm0, %v23_v6, 0.0  ;;  %v28_v10 = vadd.f32 %v27_v8, %v26_v7  ;;  %s79_s28 = sshll.u32 %s136_s27, 4  ;;  %s137_s1 = smov 64   ;;  %s80_s28 = int_to_ptr.vmem [resolvable:$true] %s79_s28 }
   0x6   :  { %30 = vadd.xlane.f32.xlu0 %v29_v9  ;;  %s138_s2 = smov 4  }
   0x7   :  { %v32_v11 = vsel %vm20_vm0, %v28_v10, 0.0 }
   0xe   :  { %33 = vadd.xlane.f32.xlu0 %v32_v11 }
  0x79   :  { %v31_v13 = vpop.xlane.xlu0 %30 }
  0x7a   :  { %v35_v14 = vmul.f32 0.03125, %v31_v13 }
  0x7c   :  { %73 = vst.msk [vmem:[%s202_s4] sm:$0xf] %vm72_vm1, %v35_v14  ;;  %v37_v16 = vmul.f32 %v35_v14, %v35_v14 }
  0x81   :  { %v34_v15 = vpop.xlane.xlu0 %33 }
  0x82   :  { %v36_v17 = vmul.f32 0.03125, %v34_v15 }
  0x84   :  { %v38_v18 = vsub.f32 %v36_v17, %v37_v16 }
  0x86   :  { %v39_v19 = vmax.f32 %v38_v18, 0.0 }
  0x88   :  { %v40_v20 = vadd.f32 1e-06, %v39_v19  ;;  %74 = vst.msk [vmem:[%s203_s5] sm:$0xf] %vm72_vm1, %v39_v19 }
  0x8a   :  { %107 = vrsqrt.f32 %v40_v20  ;;  %vm47_vm3 = vweird.f32 %v40_v20 }
  0x90   :  { %v108_v21 = vpop.eup %107 }
  0x91   :  { %v42_v22 = vmul.f32 %v108_v21, %v40_v20  ;;  %vm48_vm2 = vweird.f32 %v108_v21 }
  0x92   :  { %vm49_vm4 = vmor %vm47_vm3, %vm48_vm2 }
  0x93   :  { %v43_v23 = vmul.f32 %v108_v21, %v42_v22 }
  0x95   :  { %v44_v24 = vmul.f32 0.5, %v43_v23 }
  0x97   :  { %v45_v25 = vsub.f32 1.5, %v44_v24 }
  0x99   :  { %v46_v26 = vmul.f32 %v108_v21, %v45_v25 }
  0x9b   :  { %v50_v28 = vsel %vm49_vm4, %v108_v21, %v46_v26 }
  0x9c   :  { %v52_v29 = vmul.f32 %v51_v27, %v50_v28 }
  0x9e   :  { %58 = vperm.xlu1 %105, %v52_v29   ;;  %v54_v30 = vmul.f32 %v52_v29, %v35_v14 }
  0xa0   :  { %v55_v32 = vsub.f32 %v53_v31, %v54_v30 }
  0xa6   :  { %65 = vperm.xlu1 %105, %v55_v32  }
 0x110   :  { %v59_v33 = vpop.permute.xlu1 %58 }
 0x111   :  { %v61_v34 = vmul.f32 %v59_v33, %v18_v0  ;;  %v62_v35 = vmul.f32 %v59_v33, %v19_v1 }
 0x118   :  { %v66_v36 = vpop.permute.xlu1 %65 }
 0x119   :  { %v68_v37 = vadd.f32 %v66_v36, %v61_v34  ;;  %v69_v38 = vadd.f32 %v66_v36, %v62_v35 }
 0x11b   :  { %70 = vst.msk [vmem:[#allocation2] sm:$0xf] %vm20_vm0, %v68_v37 }
 0x11c   :  { %71 = vst.msk [vmem:[#allocation2 + $0x4] sm:$0xf] %vm20_vm0, %v69_v38 }
 0x11d   :  { %87 = dma.vmem_to_hbm [thread:$0]  %s80_s28, 128, %s82_s6, [#allocation3], %s137_s1, %s137_s1, %s138_s2  }
 0x11e   :  { %133 = dma.done.wait [#allocation3], 128  }
 0x11f   :  { %134 = vsyncadd [#allocation3], 4294967168 }
 0x120   :  { %100 = vsyncpa [#allocation3], 1 }

</bundles_post_ra>
